<compile_context>
chip_gen: v5e
topology: v5e:2x2
jax: 0.10.0
libtpu: 0.0.40
codegen_flags: <defaults>
</compile_context>

<pallas_src>
import functools

import jax
import jax.numpy as jnp
from jax import lax
from jax.experimental import pallas as pl
from jax.experimental.pallas import tpu as pltpu


# ----------------------------- helpers ------------------------------------ #

def _round_up(n, m):
    return ((n + m - 1) // m) * m


def _pad2d(a, rows, cols):
    r, c = a.shape
    if r == rows and c == cols:
        return a
    return jnp.pad(a, ((0, rows - r), (0, cols - c)))


def _layernorm_rows(y, gamma, beta, d_model, eps):
    """y: (tm, Dp) f32; gamma/beta: (1, Dp) f32.  Torch-module semantics:
    unbiased std (ddof=1), eps added to std (not to the variance)."""
    col = lax.broadcasted_iota(jnp.int32, y.shape, 1)
    feat = col < d_model                                  # mask padded lanes
    ym = jnp.where(feat, y, 0.0)
    mean = jnp.sum(ym, axis=-1, keepdims=True) / d_model
    diff = jnp.where(feat, y - mean, 0.0)
    var = jnp.sum(diff * diff, axis=-1, keepdims=True) / (d_model - 1)
    inv = pl.reciprocal(jnp.sqrt(var) + eps, approx=False)   # (tm,1) on EUP
    return gamma * (diff * inv) + beta


def _ffn_body(x_ref, w1_ref, b1_ref, w2_ref, b2_ref):
    # x: (tm, Dp); w1: (Dp, Fp) MXU-native [K,N]; w2: (Fp, Dp); biases (1,·) f32.
    x = x_ref[...]
    h = jnp.dot(x, w1_ref[...], preferred_element_type=jnp.float32)
    h = jnp.maximum(h + b1_ref[...], 0.0)           # f32 bias + ReLU (v5e-safe)
    # dropout (eval mode) == identity
    y = jnp.dot(h.astype(w2_ref.dtype), w2_ref[...],
                preferred_element_type=jnp.float32)
    return y + b2_ref[...]


# ------------------------------- kernels ----------------------------------- #

def ffn_kernel(x_ref, w1_ref, b1_ref, w2_ref, b2_ref, o_ref):
    o_ref[...] = _ffn_body(x_ref, w1_ref, b1_ref, w2_ref, b2_ref).astype(o_ref.dtype)


def ffn_ln_kernel(x_ref, w1_ref, b1_ref, w2_ref, b2_ref, g_ref, bt_ref, o_ref,
                  *, d_model, eps):
    # Last layer: LayerNormalization fused into the epilogue (f32 tile).
    y = _ffn_body(x_ref, w1_ref, b1_ref, w2_ref, b2_ref)
    o_ref[...] = _layernorm_rows(y, g_ref[...], bt_ref[...],
                                 d_model, eps).astype(o_ref.dtype)


def layernorm_kernel(x_ref, g_ref, b_ref, o_ref, *, d_model, eps):
    y = x_ref[...].astype(jnp.float32)
    o_ref[...] = _layernorm_rows(y, g_ref[...], b_ref[...],
                                 d_model, eps).astype(o_ref.dtype)


# ------------------------------ FFN layer ---------------------------------- #

def _ffn_layer(xp, w1, b1, w2, b2, *, d_model, tm, compute_dtype, out_dtype,
               norm=None, eps=1e-6):
    """One encoder layer on a pre-padded activation.

    xp: (Mp, Dp) already padded and cast to compute_dtype.
    w1: (d_ff, d_model), b1: (d_ff,), w2: (d_model, d_ff), b2: (d_model,)
        (PyTorch nn.Linear layouts).
    norm: optional (gamma_p, beta_p) -> fuse the final LayerNormalization.
    """
    Mp, Dp = xp.shape
    d_ff = w1.shape[0]
    Fp = _round_up(d_ff, 128)
    cdt = compute_dtype

    # One-time HBM-side transpose to MXU-native [K, N] layout, amortized over
    # the whole row grid (no per-step in-kernel transpose of resident weights).
    w1t = _pad2d(jnp.transpose(w1).astype(cdt), Dp, Fp)       # (Dp, Fp)
    w2t = _pad2d(jnp.transpose(w2).astype(cdt), Fp, Dp)       # (Fp, Dp)
    b1p = _pad2d(b1.reshape(1, -1).astype(jnp.float32), 1, Fp)
    b2p = _pad2d(b2.reshape(1, -1).astype(jnp.float32), 1, Dp)

    # Explicit scoped-VMEM budget: double-buffered x/out tiles, single-buffered
    # resident weights, f32 biases/gamma/beta, f32 h and y intermediates.
    isz = jnp.dtype(cdt).itemsize
    osz = jnp.dtype(out_dtype).itemsize
    need = (2 * tm * Dp * isz                 # x tiles (double-buffered)
            + 2 * tm * Dp * osz               # out tiles (double-buffered)
            + 2 * Dp * Fp * isz               # W1^T + W2^T (single-buffered)
            + 4 * (Fp + 3 * Dp)               # f32 b1, b2, gamma, beta
            + tm * Fp * 4 + tm * Dp * 4)      # f32 h and y intermediates
    vmem_limit = int(min(max(1.25 * need, 16 << 20) + (4 << 20), 100 << 20))

    def resident(shape):
        # Constant block index -> single buffer (no double-buffer VMEM waste).
        return pl.BlockSpec(shape, lambda i: (0, 0), pipeline_mode=pl.Buffered(1))

    in_specs = [
        pl.BlockSpec((tm, Dp), lambda i: (i, 0)),     # x row tile
        resident((Dp, Fp)),                           # W1^T
        resident((1, Fp)),                            # b1
        resident((Fp, Dp)),                           # W2^T
        resident((1, Dp)),                            # b2
    ]
    args = [xp, w1t, b1p, w2t, b2p]

    if norm is None:
        kernel = ffn_kernel
    else:
        gamma_p, beta_p = norm
        kernel = functools.partial(ffn_ln_kernel, d_model=d_model, eps=eps)
        in_specs += [resident((1, Dp)), resident((1, Dp))]
        args += [gamma_p, beta_p]

    # TODO(synk): if even bf16 resident weights exceed ~half of v7x's 64 MiB
    # VMEM, add a trailing "arbitrary" grid axis over Fp//tk with an f32
    # accumulator scratch (pl.when init at k==0, epilogue at k==last).
    return pl.pallas_call(
        kernel,
        out_shape=jax.ShapeDtypeStruct((Mp, Dp), out_dtype),
        grid_spec=pltpu.PrefetchScalarGridSpec(
            num_scalar_prefetch=0,
            grid=(Mp // tm,),
            in_specs=in_specs,
            out_specs=pl.BlockSpec((tm, Dp), lambda i: (i, 0)),
        ),
        compiler_params=pltpu.CompilerParams(
            dimension_semantics=("parallel",),
            vmem_limit_bytes=vmem_limit),
    )(*args)


# ------------------------ standalone LayerNormalization -------------------- #

def layernorm_pallas(x2, gamma, beta, *, eps=1e-6, tm=512):
    """Standalone LN (only used when the encoder has zero layers)."""
    M, d_model = x2.shape
    Dp = _round_up(d_model, 128)
    Mp = _round_up(M, tm)
    xp = _pad2d(x2, Mp, Dp)
    gp = _pad2d(gamma.reshape(1, -1).astype(jnp.float32), 1, Dp)
    bp = _pad2d(beta.reshape(1, -1).astype(jnp.float32), 1, Dp)

    kernel = functools.partial(layernorm_kernel, d_model=d_model, eps=eps)
    out = pl.pallas_call(
        kernel,
        out_shape=jax.ShapeDtypeStruct((Mp, Dp), x2.dtype),
        grid_spec=pltpu.PrefetchScalarGridSpec(
            num_scalar_prefetch=0,
            grid=(Mp // tm,),
            in_specs=[
                pl.BlockSpec((tm, Dp), lambda i: (i, 0)),
                pl.BlockSpec((1, Dp), lambda i: (0, 0),
                             pipeline_mode=pl.Buffered(1)),
                pl.BlockSpec((1, Dp), lambda i: (0, 0),
                             pipeline_mode=pl.Buffered(1)),
            ],
            out_specs=pl.BlockSpec((tm, Dp), lambda i: (i, 0)),
        ),
        compiler_params=pltpu.CompilerParams(
            dimension_semantics=("parallel",)),
    )(xp, gp, bp)
    return out[:M, :d_model]


# -------------------------------- Encoder ---------------------------------- #

def encoder_pallas(x, mask, layer_params, gamma, beta, *, eps=1e-6, tm=256,
                   compute_dtype=jnp.bfloat16):
    """Encoder.forward: for layer in layers: x = layer(x, mask); return norm(x).

    compute_dtype defaults to bf16 (v6e/v7x MXU fast path; halves resident
    weight VMEM).  Dots accumulate in f32, bias/ReLU/LayerNorm math is f32 on
    every chip.  Pass compute_dtype=jnp.float32 for the near-exact path.
    """
    del mask  # unused by the FFN stand-in layers (no attention in the spec)
    B, S, d_model = x.shape
    out_dtype = x.dtype
    cdt = compute_dtype if compute_dtype is not None else x.dtype
    M = B * S
    Dp = _round_up(d_model, 128)
    Mp = _round_up(M, tm)

    x2 = x.reshape(M, d_model)
    if not layer_params:
        return layernorm_pallas(x2, gamma, beta, eps=eps).reshape(B, S, d_model)

    gamma_p = _pad2d(gamma.reshape(1, -1).astype(jnp.float32), 1, Dp)
    beta_p = _pad2d(beta.reshape(1, -1).astype(jnp.float32), 1, Dp)

    # Pad/cast once; keep inter-layer activations in the padded compute-dtype
    # layout (no per-layer pad/slice/cast HBM round-trips).
    xp = _pad2d(x2, Mp, Dp).astype(cdt)
    n = len(layer_params)
    for li, (w1, b1, w2, b2) in enumerate(layer_params):
        last = li == n - 1
        xp = _ffn_layer(
            xp, w1, b1, w2, b2,
            d_model=d_model, tm=tm, compute_dtype=cdt,
            out_dtype=out_dtype if last else cdt,
            norm=(gamma_p, beta_p) if last else None,   # fuse final LayerNorm
            eps=eps)
    return xp[:M, :d_model].reshape(B, S, d_model)


# ------------------------------- reference --------------------------------- #

def encoder_ref(x, layer_params, gamma, beta, eps=1e-6):
    for (w1, b1, w2, b2) in layer_params:
        h = jnp.maximum(jnp.einsum("bsd,fd->bsf", x, w1) + b1, 0.0)
        x = jnp.einsum("bsf,df->bsd", h, w2) + b2
    mean = x.mean(axis=-1, keepdims=True)
    std = jnp.std(x, axis=-1, keepdims=True, ddof=1)   # torch unbiased std
    return gamma * (x - mean) / (std + eps) + beta


# ---------------------------------- main ------------------------------------ #

if __name__ == "__main__":
    B, S, d_model, d_ff, n_layers = 2, 8, 32, 64, 2
    key = jax.random.PRNGKey(0)
    kx, key = jax.random.split(key)
    x = jax.random.normal(kx, (B, S, d_model), dtype=jnp.float32)
    mask = jnp.ones((B, 1, S, S), dtype=jnp.float32)   # unused by FFN layers

    bound1 = 1.0 / (d_model ** 0.5)
    bound2 = 1.0 / (d_ff ** 0.5)
    layer_params = []
    for _ in range(n_layers):
        key, k1, k2, k3, k4 = jax.random.split(key, 5)
        w1 = jax.random.uniform(k1, (d_ff, d_model), jnp.float32, -bound1, bound1)
        b1 = jax.random.uniform(k2, (d_ff,), jnp.float32, -bound1, bound1)
        w2 = jax.random.uniform(k3, (d_model, d_ff), jnp.float32, -bound2, bound2)
        b2 = jax.random.uniform(k4, (d_model,), jnp.float32, -bound2, bound2)
        layer_params.append((w1, b1, w2, b2))
    gamma = jnp.ones((d_model,), jnp.float32)
    beta = jnp.zeros((d_model,), jnp.float32)

    ref = encoder_ref(x, layer_params, gamma, beta)

    # Near-exact f32 path.  Tolerance accounts for the default-precision MXU
    # f32 accumulation across two stacked layers plus the 1/std amplification
    # of the final (fused) norm.
    out_f32 = encoder_pallas(x, mask, layer_params, gamma, beta,
                             compute_dtype=jnp.float32)
    jax.block_until_ready(out_f32)
    assert out_f32.shape == (B, S, d_model)
    assert jnp.allclose(out_f32, ref, atol=1e-3, rtol=1e-3), \
        float(jnp.max(jnp.abs(out_f32 - ref)))

    # Default (bf16 compute, f32 accumulation) fast path.
    out_bf16 = encoder_pallas(x, mask, layer_params, gamma, beta)
    jax.block_until_ready(out_bf16)
    assert out_bf16.shape == (B, S, d_model)
    assert jnp.allclose(out_bf16, ref, atol=0.3, rtol=0.0), \
        float(jnp.max(jnp.abs(out_bf16 - ref)))

    # Zero-layer encoder == standalone LayerNormalization kernel.
    out_ln = encoder_pallas(x, mask, [], gamma, beta)
    jax.block_until_ready(out_ln)
    assert jnp.allclose(out_ln, encoder_ref(x, [], gamma, beta),
                        atol=1e-4, rtol=1e-4)

    print("KERNEL_OK")
</pallas_src>

<mosaic_0001>
module attributes {stable_mosaic.version = 11 : i64} {
  func.func @ffn_kernel(%arg0: i32, %arg1: memref<256x128xf32, #tpu.memory_space<vmem>>, %arg2: memref<128x128xf32, #tpu.memory_space<vmem>>, %arg3: memref<1x128xf32, #tpu.memory_space<vmem>>, %arg4: memref<128x128xf32, #tpu.memory_space<vmem>>, %arg5: memref<1x128xf32, #tpu.memory_space<vmem>>, %arg6: memref<256x128xf32, #tpu.memory_space<vmem>>) attributes {dimension_semantics = [#tpu.dimension_semantics<parallel>], iteration_bounds = array<i64: 1>, scalar_prefetch = 0 : i64, scratch_operands = 0 : i64, tpu.core_type = #tpu.core_type<tc>, window_params = [{transform_indices = @transform_0, window_bounds = array<i64: 256, 128>}, {pipeline_mode = #tpu.pipeline_mode<synchronous>, transform_indices = @transform_1, window_bounds = array<i64: 128, 128>}, {pipeline_mode = #tpu.pipeline_mode<synchronous>, transform_indices = @transform_2, window_bounds = array<i64: 1, 128>}, {pipeline_mode = #tpu.pipeline_mode<synchronous>, transform_indices = @transform_3, window_bounds = array<i64: 128, 128>}, {pipeline_mode = #tpu.pipeline_mode<synchronous>, transform_indices = @transform_4, window_bounds = array<i64: 1, 128>}, {transform_indices = @transform_5, window_bounds = array<i64: 256, 128>}]} {
    %c0 = arith.constant 0 : index
    %c0_0 = arith.constant 0 : index
    %0 = vector.load %arg1[%c0, %c0_0] : memref<256x128xf32, #tpu.memory_space<vmem>>, vector<256x128xf32>
    %c0_1 = arith.constant 0 : index
    %c0_2 = arith.constant 0 : index
    %1 = vector.load %arg2[%c0_1, %c0_2] : memref<128x128xf32, #tpu.memory_space<vmem>>, vector<128x128xf32>
    %cst = arith.constant dense<0.000000e+00> : vector<256x128xf32>
    %2 = tpu.matmul %0, %1, %cst {dimension_numbers = #tpu.dot_dimension_numbers<[1], [0], [0], [1], [0, 0, 1, 1], [], []>} : vector<256x128xf32>, vector<128x128xf32>, vector<256x128xf32> -> vector<256x128xf32>
    %c0_3 = arith.constant 0 : index
    %c0_4 = arith.constant 0 : index
    %3 = vector.load %arg3[%c0_3, %c0_4] : memref<1x128xf32, #tpu.memory_space<vmem>>, vector<1x128xf32>
    %4 = vector.broadcast %3 : vector<1x128xf32> to vector<256x128xf32>
    %5 = arith.addf %2, %4 : vector<256x128xf32>
    %cst_5 = arith.constant 0.000000e+00 : f32
    %6 = vector.broadcast %cst_5 : f32 to vector<256x128xf32>
    %7 = arith.maximumf %5, %6 : vector<256x128xf32>
    %c0_6 = arith.constant 0 : index
    %c0_7 = arith.constant 0 : index
    %8 = vector.load %arg4[%c0_6, %c0_7] : memref<128x128xf32, #tpu.memory_space<vmem>>, vector<128x128xf32>
    %cst_8 = arith.constant dense<0.000000e+00> : vector<256x128xf32>
    %9 = tpu.matmul %7, %8, %cst_8 {dimension_numbers = #tpu.dot_dimension_numbers<[1], [0], [0], [1], [0, 0, 1, 1], [], []>} : vector<256x128xf32>, vector<128x128xf32>, vector<256x128xf32> -> vector<256x128xf32>
    %c0_9 = arith.constant 0 : index
    %c0_10 = arith.constant 0 : index
    %10 = vector.load %arg5[%c0_9, %c0_10] : memref<1x128xf32, #tpu.memory_space<vmem>>, vector<1x128xf32>
    %11 = vector.broadcast %10 : vector<1x128xf32> to vector<256x128xf32>
    %12 = arith.addf %9, %11 : vector<256x128xf32>
    %c0_11 = arith.constant 0 : index
    %c0_12 = arith.constant 0 : index
    %13 = vector.load %arg6[%c0_11, %c0_12] : memref<256x128xf32, #tpu.memory_space<vmem>>, vector<256x128xf32>
    tpu.vector_store %arg6[%c0_11, %c0_12], %12 {strides = array<i32>} : memref<256x128xf32, #tpu.memory_space<vmem>>, vector<256x128xf32>,
    return
  }
  func.func @transform_0(%arg0: i32) -> (i32, i32) {
    %c0_i32 = arith.constant 0 : i32
    %c0_i32_0 = arith.constant 0 : i32
    return %arg0, %c0_i32 : i32, i32
  }
  func.func @transform_1(%arg0: i32) -> (i32, i32) {
    %c0_i32 = arith.constant 0 : i32
    %c0_i32_0 = arith.constant 0 : i32
    %c0_i32_1 = arith.constant 0 : i32
    return %c0_i32, %c0_i32_0 : i32, i32
  }
  func.func @transform_2(%arg0: i32) -> (i32, i32) {
    %c0_i32 = arith.constant 0 : i32
    %c0_i32_0 = arith.constant 0 : i32
    %c0_i32_1 = arith.constant 0 : i32
    return %c0_i32, %c0_i32_0 : i32, i32
  }
  func.func @transform_3(%arg0: i32) -> (i32, i32) {
    %c0_i32 = arith.constant 0 : i32
    %c0_i32_0 = arith.constant 0 : i32
    %c0_i32_1 = arith.constant 0 : i32
    return %c0_i32, %c0_i32_0 : i32, i32
  }
  func.func @transform_4(%arg0: i32) -> (i32, i32) {
    %c0_i32 = arith.constant 0 : i32
    %c0_i32_0 = arith.constant 0 : i32
    %c0_i32_1 = arith.constant 0 : i32
    return %c0_i32, %c0_i32_0 : i32, i32
  }
  func.func @transform_5(%arg0: i32) -> (i32, i32) {
    %c0_i32 = arith.constant 0 : i32
    %c0_i32_0 = arith.constant 0 : i32
    return %arg0, %c0_i32 : i32, i32
  }
}

</mosaic_0001>

<bundles_post_ra>
// kernel: tpu_custom_call.1
= control target key start
LH: loop header
LB: loop body
LE: loop exit
PB: predicated region body
PF: predicated region fallthrough
CT: control target
= control target key end

     0   :  { %10 = vsyncpa [#allocation3], 0  ;;  %s726_s0 = inlined_call_operand.hbm [shape: f32[256,128], index: 0, kind: input, shape index: {}]   ;;  %s727_s1 = inlined_call_operand.hbm [shape: f32[128,128], index: 1, kind: input, shape index: {}]   ;;  %s728_s2 = inlined_call_operand.vmem [shape: f32[1,128], index: 2, kind: input, shape index: {}]   ;;  %s729_s3 = inlined_call_operand.hbm [shape: f32[128,128], index: 3, kind: input, shape index: {}]   ;;  %s730_s4 = inlined_call_operand.vmem [shape: f32[1,128], index: 4, kind: input, shape index: {}]   ;;  %s731_s5 = inlined_call_operand.hbm [shape: f32[256,128], index: 5, kind: output, shape index: {}]  }
   0x1   :  { %11 = vsyncpa [#allocation6], 0 }
   0x2   :  { %12 = vsyncpa [#allocation4], 0  ;;  %s30_s20 = sshll.u32 %s727_s1, 4  ;;  %s592_s21 = smov [#allocation5]   ;;  %s31_s20 = int_to_ptr.hbm [resolvable:$true] %s30_s20 }
   0x3   :  { %s32_s22 = sshll.u32 %s592_s21, 4  ;;  %s17_s25 = sshll.u32 %s726_s0, 4  ;;  %s33_s22 = int_to_ptr.vmem [resolvable:$true] %s32_s22  ;;  %s18_s25 = int_to_ptr.hbm [resolvable:$true] %s17_s25 }
   0x4   :  { %s593_s26 = smov 128   ;;  %s594_s27 = smov 8  }
   0x5   :  { %38 = dma.hbm_to_vmem [thread:$0]  %s31_s20, 2048, %s33_s22, [#allocation6], %s593_s26, %s593_s26, %s594_s27  }
   0x6   :  { %s595_s28 = smov [#allocation2]   ;;  %s45_s1 = sshll.u32 %s729_s3, 4  ;;  %s46_s1 = int_to_ptr.hbm [resolvable:$true] %s45_s1 }
   0x7   :  { %s19_s29 = sshll.u32 %s595_s28, 4  ;;  %s596_s0 = smov [#allocation7]   ;;  %s20_s29 = int_to_ptr.vmem [resolvable:$true] %s19_s29 }
   0x8   :  { %25 = dma.hbm_to_vmem [thread:$0]  %s18_s25, 4096, %s20_s29, [#allocation3], %s593_s26, %s593_s26, %s594_s27  }
   0x9   :  { %s47_s7 = sshll.u32 %s596_s0, 4  ;;  %s48_s7 = int_to_ptr.vmem [resolvable:$true] %s47_s7 }
   0xa   :  { %53 = dma.hbm_to_vmem [thread:$0]  %s46_s1, 2048, %s48_s7, [#allocation6], %s593_s26, %s593_s26, %s594_s27  }
   0xb   :  { %586 = dma.done.wait [#allocation3], 4096  }
   0xc   :  { %587 = vsyncadd [#allocation3], 4294963200 }
   0xd   :  { %588 = dma.done.wait [#allocation6], 4096  }
   0xe   :  { %589 = vsyncadd [#allocation6], 4294963200  ;;  %v115_v0 = vld [vmem:[#allocation5 + $0x78] sm:$0xff]  ;;  %v114_v1 = vld [vmem:[#allocation5 + $0x70] sm:$0xff]  ;;  %s436_s13 = sshll.u32 %s731_s5, 4  ;;  %s437_s13 = int_to_ptr.hbm [resolvable:$true] %s436_s13 }
   0xf   :  { %450 = vmatpush.msra.mxu2 %v115_v0  ;;  %120 = vmatpush.msra.mxu0 %v115_v0  ;;  %v113_v2 = vld [vmem:[#allocation5 + $0x68] sm:$0xff]  ;;  %v112_v3 = vld [vmem:[#allocation5 + $0x60] sm:$0xff]  ;;  %v111_v4 = vld [vmem:[#allocation5 + $0x58] sm:$0xff] }
  0x10   :  { %v110_v5 = vld [vmem:[#allocation5 + $0x50] sm:$0xff]  ;;  %v109_v6 = vld [vmem:[#allocation5 + $0x48] sm:$0xff]  ;;  %v108_v7 = vld [vmem:[#allocation5 + $0x40] sm:$0xff] }
  0x11   :  { %451 = vmatpush.msra.mxu2 %v114_v1  ;;  %121 = vmatpush.msra.mxu0 %v114_v1  ;;  %v107_v8 = vld [vmem:[#allocation5 + $0x38] sm:$0xff]  ;;  %v106_v9 = vld [vmem:[#allocation5 + $0x30] sm:$0xff]  ;;  %v105_v10 = vld [vmem:[#allocation5 + $0x28] sm:$0xff] }
  0x12   :  { %v104_v11 = vld [vmem:[#allocation5 + $0x20] sm:$0xff]  ;;  %v103_v12 = vld [vmem:[#allocation5 + $0x18] sm:$0xff]  ;;  %v102_v13 = vld [vmem:[#allocation5 + $0x10] sm:$0xff] }
  0x13   :  { %452 = vmatpush.msra.mxu2 %v113_v2  ;;  %122 = vmatpush.msra.mxu0 %v113_v2  ;;  %v101_v14 = vld [vmem:[#allocation5 + $0x8] sm:$0xff]  ;;  %v100_v15 = vld [vmem:[#allocation5] sm:$0xff]  ;;  %v86_v20 = vld [vmem:[#allocation2 + $0x90] sm:$0xff] }
  0x14   :  { %v84_v16 = vld [vmem:[#allocation2 + $0x80] sm:$0xff]  ;;  %v85_v18 = vld [vmem:[#allocation2 + $0x88] sm:$0xff]  ;;  %v70_v21 = vld [vmem:[#allocation2 + $0x10] sm:$0xff] }
  0x15   :  { %453 = vmatpush.msra.mxu2 %v112_v3  ;;  %123 = vmatpush.msra.mxu0 %v112_v3  ;;  %v68_v17 = vld [vmem:[#allocation2] sm:$0xff]  ;;  %v69_v19 = vld [vmem:[#allocation2 + $0x8] sm:$0xff]  ;;  %v87_v22 = vld [vmem:[#allocation2 + $0x98] sm:$0xff] }
  0x16   :  { %v71_v23 = vld [vmem:[#allocation2 + $0x18] sm:$0xff]  ;;  %v88_v24 = vld [vmem:[#allocation2 + $0xa0] sm:$0xff]  ;;  %v89_v26 = vld [vmem:[#allocation2 + $0xa8] sm:$0xff] }
  0x17   :  { %454 = vmatpush.msra.mxu2 %v111_v4  ;;  %124 = vmatpush.msra.mxu0 %v111_v4  ;;  %v72_v25 = vld [vmem:[#allocation2 + $0x20] sm:$0xff]  ;;  %v73_v27 = vld [vmem:[#allocation2 + $0x28] sm:$0xff]  ;;  %v90_v28 = vld [vmem:[#allocation2 + $0xb0] sm:$0xff] }
  0x18   :  { %v74_v29 = vld [vmem:[#allocation2 + $0x30] sm:$0xff]  ;;  %v91_v30 = vld [vmem:[#allocation2 + $0xb8] sm:$0xff]  ;;  %v92_v32 = vld [vmem:[#allocation2 + $0xc0] sm:$0xff] }
  0x19   :  { %455 = vmatpush.msra.mxu2 %v110_v5  ;;  %125 = vmatpush.msra.mxu0 %v110_v5  ;;  %v75_v31 = vld [vmem:[#allocation2 + $0x38] sm:$0xff]  ;;  %v76_v33 = vld [vmem:[#allocation2 + $0x40] sm:$0xff]  ;;  %v93_v34 = vld [vmem:[#allocation2 + $0xc8] sm:$0xff] }
  0x1a   :  { %v77_v35 = vld [vmem:[#allocation2 + $0x48] sm:$0xff]  ;;  %v280_v36 = vld [vmem:[#allocation7 + $0x78] sm:$0xff]  ;;  %v279_v37 = vld [vmem:[#allocation7 + $0x70] sm:$0xff] }
  0x1b   :  { %456 = vmatpush.msra.mxu2 %v109_v6  ;;  %126 = vmatpush.msra.mxu0 %v109_v6  ;;  %v278_v38 = vld [vmem:[#allocation7 + $0x68] sm:$0xff]  ;;  %v277_v39 = vld [vmem:[#allocation7 + $0x60] sm:$0xff]  ;;  %v94_v40 = vld [vmem:[#allocation2 + $0xd0] sm:$0xff] }
  0x1c   :  { %466 = vmatpush.msra.mxu3 %v280_v36  ;;  %285 = vmatpush.msra.mxu1 %v280_v36  ;;  %v78_v41 = vld [vmem:[#allocation2 + $0x50] sm:$0xff]  ;;  %v276_v42 = vld [vmem:[#allocation7 + $0x58] sm:$0xff]  ;;  %v274_v44 = vld [vmem:[#allocation7 + $0x48] sm:$0xff] }
  0x1d   :  { %457 = vmatpush.msra.mxu2 %v108_v7  ;;  %127 = vmatpush.msra.mxu0 %v108_v7  ;;  %v275_v43 = vld [vmem:[#allocation7 + $0x50] sm:$0xff]  ;;  %v273_v45 = vld [vmem:[#allocation7 + $0x40] sm:$0xff]  ;;  %v95_v46 = vld [vmem:[#allocation2 + $0xd8] sm:$0xff] }
  0x1e   :  { %467 = vmatpush.msra.mxu3 %v279_v37  ;;  %286 = vmatpush.msra.mxu1 %v279_v37  ;;  %v79_v47 = vld [vmem:[#allocation2 + $0x58] sm:$0xff]  ;;  %v271_v49 = vld [vmem:[#allocation7 + $0x30] sm:$0xff]  ;;  %v270_v50 = vld [vmem:[#allocation7 + $0x28] sm:$0xff] }
  0x1f   :  { %458 = vmatpush.msra.mxu2 %v107_v8  ;;  %128 = vmatpush.msra.mxu0 %v107_v8  ;;  %v272_v48 = vld [vmem:[#allocation7 + $0x38] sm:$0xff]  ;;  %v269_v51 = vld [vmem:[#allocation7 + $0x20] sm:$0xff]  ;;  %v267_v55 = vld [vmem:[#allocation7 + $0x10] sm:$0xff] }
  0x20   :  { %468 = vmatpush.msra.mxu3 %v278_v38  ;;  %287 = vmatpush.msra.mxu1 %v278_v38  ;;  %v96_v52 = vld [vmem:[#allocation2 + $0xe0] sm:$0xff]  ;;  %v268_v54 = vld [vmem:[#allocation7 + $0x18] sm:$0xff]  ;;  %v266_v56 = vld [vmem:[#allocation7 + $0x8] sm:$0xff] }
  0x21   :  { %459 = vmatpush.msra.mxu2 %v106_v9  ;;  %129 = vmatpush.msra.mxu0 %v106_v9  ;;  %v80_v53 = vld [vmem:[#allocation2 + $0x60] sm:$0xff]  ;;  %v97_v57 = vld [vmem:[#allocation2 + $0xe8] sm:$0xff]  ;;  %v98_v60 = vld [vmem:[#allocation2 + $0xf0] sm:$0xff] }
  0x22   :  { %469 = vmatpush.msra.mxu3 %v277_v39  ;;  %288 = vmatpush.msra.mxu1 %v277_v39  ;;  %v81_v58 = vld [vmem:[#allocation2 + $0x68] sm:$0xff]  ;;  %v265_v59 = vld [vmem:[#allocation7] sm:$0xff]  ;;  %v82_v61 = vld [vmem:[#allocation2 + $0x70] sm:$0xff] }
  0x23   :  { %460 = vmatpush.msra.mxu2 %v105_v10  ;;  %130 = vmatpush.msra.mxu0 %v105_v10  ;;  %v99_v62 = vld [vmem:[#allocation2 + $0xf8] sm:$0xff]  ;;  %v649_v0 = vld [vmem:[%s728_s2] ss:$0 sm:$0xff] }
  0x24   :  { %470 = vmatpush.msra.mxu3 %v276_v42  ;;  %289 = vmatpush.msra.mxu1 %v276_v42  ;;  %v83_v63 = vld [vmem:[#allocation2 + $0x78] sm:$0xff] }
  0x25   :  { %461 = vmatpush.msra.mxu2 %v104_v11  ;;  %131 = vmatpush.msra.mxu0 %v104_v11 }
  0x26   :  { %471 = vmatpush.msra.mxu3 %v275_v43  ;;  %290 = vmatpush.msra.mxu1 %v275_v43 }
  0x27   :  { %462 = vmatpush.msra.mxu2 %v103_v12  ;;  %132 = vmatpush.msra.mxu0 %v103_v12 }
  0x28   :  { %472 = vmatpush.msra.mxu3 %v274_v44  ;;  %291 = vmatpush.msra.mxu1 %v274_v44 }
  0x29   :  { %463 = vmatpush.msra.mxu2 %v102_v13  ;;  %133 = vmatpush.msra.mxu0 %v102_v13 }
  0x2a   :  { %473 = vmatpush.msra.mxu3 %v273_v45  ;;  %292 = vmatpush.msra.mxu1 %v273_v45 }
  0x2b   :  { %464 = vmatpush.msra.mxu2 %v101_v14  ;;  %134 = vmatpush.msra.mxu0 %v101_v14 }
  0x2c   :  { %474 = vmatpush.msra.mxu3 %v272_v48  ;;  %293 = vmatpush.msra.mxu1 %v272_v48 }
  0x2d   :  { %465 = vmatpush.msra.mxu2 %v100_v15  ;;  %135 = vmatpush.msra.mxu0 %v100_v15 }
  0x2e   :  { %184 = vmatmul.f32.vlgmr.msra.gmra.mxu2 %v84_v16  ;;  %136 = vmatmul.f32.vlgmr.msra.gmra.mxu0 %v68_v17 }
  0x2f   :  { %475 = vmatpush.msra.mxu3 %v271_v49  ;;  %294 = vmatpush.msra.mxu1 %v271_v49 }
  0x31   :  { %476 = vmatpush.msra.mxu3 %v270_v50  ;;  %295 = vmatpush.msra.mxu1 %v270_v50 }
  0x33   :  { %477 = vmatpush.msra.mxu3 %v269_v51  ;;  %296 = vmatpush.msra.mxu1 %v269_v51 }
  0x35   :  { %478 = vmatpush.msra.mxu3 %v268_v54  ;;  %297 = vmatpush.msra.mxu1 %v268_v54 }
  0x36   :  { %187 = vmatmul.f32.gmra.mxu2 %v85_v18  ;;  %139 = vmatmul.f32.gmra.mxu0 %v69_v19 }
  0x37   :  { %479 = vmatpush.msra.mxu3 %v267_v55  ;;  %298 = vmatpush.msra.mxu1 %v267_v55 }
  0x39   :  { %480 = vmatpush.msra.mxu3 %v266_v56  ;;  %299 = vmatpush.msra.mxu1 %v266_v56 }
  0x3b   :  { %481 = vmatpush.msra.mxu3 %v265_v59  ;;  %300 = vmatpush.msra.mxu1 %v265_v59 }
  0x3e   :  { %190 = vmatmul.f32.gmra.mxu2 %v86_v20  ;;  %142 = vmatmul.f32.gmra.mxu0 %v70_v21 }
  0x46   :  { %193 = vmatmul.f32.gmra.mxu2 %v87_v22  ;;  %145 = vmatmul.f32.gmra.mxu0 %v71_v23 }
  0x4e   :  { %196 = vmatmul.f32.gmra.mxu2 %v88_v24  ;;  %148 = vmatmul.f32.gmra.mxu0 %v72_v25 }
  0x56   :  { %199 = vmatmul.f32.gmra.mxu2 %v89_v26  ;;  %151 = vmatmul.f32.gmra.mxu0 %v73_v27 }
  0x5e   :  { %202 = vmatmul.f32.gmra.mxu2 %v90_v28  ;;  %154 = vmatmul.f32.gmra.mxu0 %v74_v29 }
  0x66   :  { %205 = vmatmul.f32.gmra.mxu2 %v91_v30  ;;  %157 = vmatmul.f32.gmra.mxu0 %v75_v31 }
  0x6e   :  { %208 = vmatmul.f32.gmra.mxu2 %v92_v32  ;;  %160 = vmatmul.f32.gmra.mxu0 %v76_v33 }
  0x76   :  { %211 = vmatmul.f32.gmra.mxu2 %v93_v34  ;;  %163 = vmatmul.f32.gmra.mxu0 %v77_v35 }
  0x7e   :  { %214 = vmatmul.f32.gmra.mxu2 %v94_v40  ;;  %166 = vmatmul.f32.gmra.mxu0 %v78_v41 }
  0x86   :  { %217 = vmatmul.f32.gmra.mxu2 %v95_v46  ;;  %169 = vmatmul.f32.gmra.mxu0 %v79_v47 }
  0x8e   :  { %220 = vmatmul.f32.gmra.mxu2 %v96_v52  ;;  %172 = vmatmul.f32.gmra.mxu0 %v80_v53 }
  0x96   :  { %223 = vmatmul.f32.gmra.mxu2 %v97_v57  ;;  %175 = vmatmul.f32.gmra.mxu0 %v81_v58 }
  0x9e   :  { %226 = vmatmul.f32.gmra.mxu2 %v98_v60  ;;  %178 = vmatmul.f32.gmra.mxu0 %v82_v61 }
  0xa6   :  { %229 = vmatmul.f32.gmra.mxu2 %v99_v62  ;;  %181 = vmatmul.f32.gmra.mxu0 %v83_v63 }
  0xab   :  { %v137_v1 = vpop.f32.mrf.mxu0 }
  0xac   :  { %v138_v2 = vadd.f32 %v649_v0, %v137_v1 }
  0xae   :  { %v233_v3 = vmax.f32 %v138_v2, 0.0 }
  0xb0   :  { %301 = vmatmul.f32.vlgmr.msra.gmra.mxu1 %v233_v3 }
  0xb1   :  { %v185_v4 = vpop.f32.mrf.mxu2 }
  0xb2   :  { %v186_v5 = vadd.f32 %v649_v0, %v185_v4 }
  0xb3   :  { %v140_v6 = vpop.f32.mrf.mxu0 }
  0xb4   :  { %v249_v7 = vmax.f32 %v186_v5, 0.0  ;;  %v141_v8 = vadd.f32 %v649_v0, %v140_v6 }
  0xb6   :  { %349 = vmatmul.f32.vlgmr.msra.gmra.mxu3 %v249_v7  ;;  %v234_v9 = vmax.f32 %v141_v8, 0.0 }
  0xb8   :  { %304 = vmatmul.f32.gmra.mxu1 %v234_v9 }
  0xb9   :  { %v188_v10 = vpop.f32.mrf.mxu2 }
  0xba   :  { %v189_v11 = vadd.f32 %v649_v0, %v188_v10 }
  0xbb   :  { %v143_v12 = vpop.f32.mrf.mxu0 }
  0xbc   :  { %v250_v13 = vmax.f32 %v189_v11, 0.0  ;;  %v144_v14 = vadd.f32 %v649_v0, %v143_v12 }
  0xbe   :  { %352 = vmatmul.f32.gmra.mxu3 %v250_v13  ;;  %v235_v15 = vmax.f32 %v144_v14, 0.0 }
  0xc0   :  { %307 = vmatmul.f32.gmra.mxu1 %v235_v15 }
  0xc1   :  { %v191_v16 = vpop.f32.mrf.mxu2 }
  0xc2   :  { %v192_v17 = vadd.f32 %v649_v0, %v191_v16 }
  0xc3   :  { %v146_v18 = vpop.f32.mrf.mxu0 }
  0xc4   :  { %v251_v19 = vmax.f32 %v192_v17, 0.0  ;;  %v147_v20 = vadd.f32 %v649_v0, %v146_v18 }
  0xc6   :  { %355 = vmatmul.f32.gmra.mxu3 %v251_v19  ;;  %v236_v21 = vmax.f32 %v147_v20, 0.0 }
  0xc8   :  { %310 = vmatmul.f32.gmra.mxu1 %v236_v21 }
  0xc9   :  { %v194_v22 = vpop.f32.mrf.mxu2 }
  0xca   :  { %v195_v23 = vadd.f32 %v649_v0, %v194_v22 }
  0xcb   :  { %v149_v24 = vpop.f32.mrf.mxu0 }
  0xcc   :  { %v252_v25 = vmax.f32 %v195_v23, 0.0  ;;  %v150_v26 = vadd.f32 %v649_v0, %v149_v24 }
  0xce   :  { %358 = vmatmul.f32.gmra.mxu3 %v252_v25  ;;  %v237_v27 = vmax.f32 %v150_v26, 0.0 }
  0xd0   :  { %313 = vmatmul.f32.gmra.mxu1 %v237_v27 }
  0xd1   :  { %v197_v28 = vpop.f32.mrf.mxu2 }
  0xd2   :  { %v198_v29 = vadd.f32 %v649_v0, %v197_v28 }
  0xd3   :  { %v152_v30 = vpop.f32.mrf.mxu0 }
  0xd4   :  { %v253_v31 = vmax.f32 %v198_v29, 0.0  ;;  %v153_v32 = vadd.f32 %v649_v0, %v152_v30 }
  0xd6   :  { %361 = vmatmul.f32.gmra.mxu3 %v253_v31  ;;  %v238_v33 = vmax.f32 %v153_v32, 0.0 }
  0xd8   :  { %316 = vmatmul.f32.gmra.mxu1 %v238_v33  ;;  %v686_v33 = vld [vmem:[%s730_s4] ss:$0 sm:$0xff]  ;;  %s597_s4 = smov [#allocation8]  }
  0xd9   :  { %v200_v34 = vpop.f32.mrf.mxu2  ;;  %s434_s10 = sshll.u32 %s597_s4, 4  ;;  %s435_s10 = int_to_ptr.vmem [resolvable:$true] %s434_s10 }
  0xda   :  { %v201_v35 = vadd.f32 %v649_v0, %v200_v34 }
  0xdb   :  { %v155_v36 = vpop.f32.mrf.mxu0 }
  0xdc   :  { %v254_v37 = vmax.f32 %v201_v35, 0.0  ;;  %v156_v38 = vadd.f32 %v649_v0, %v155_v36 }
  0xde   :  { %364 = vmatmul.f32.gmra.mxu3 %v254_v37  ;;  %v239_v39 = vmax.f32 %v156_v38, 0.0 }
  0xe0   :  { %319 = vmatmul.f32.gmra.mxu1 %v239_v39 }
  0xe1   :  { %v203_v40 = vpop.f32.mrf.mxu2 }
  0xe2   :  { %v204_v41 = vadd.f32 %v649_v0, %v203_v40 }
  0xe3   :  { %v158_v42 = vpop.f32.mrf.mxu0 }
  0xe4   :  { %v255_v43 = vmax.f32 %v204_v41, 0.0  ;;  %v159_v44 = vadd.f32 %v649_v0, %v158_v42 }
  0xe6   :  { %367 = vmatmul.f32.gmra.mxu3 %v255_v43  ;;  %v240_v45 = vmax.f32 %v159_v44, 0.0 }
  0xe8   :  { %322 = vmatmul.f32.gmra.mxu1 %v240_v45 }
  0xe9   :  { %v206_v46 = vpop.f32.mrf.mxu2 }
  0xea   :  { %v207_v47 = vadd.f32 %v649_v0, %v206_v46 }
  0xeb   :  { %v161_v48 = vpop.f32.mrf.mxu0 }
  0xec   :  { %v256_v49 = vmax.f32 %v207_v47, 0.0  ;;  %v162_v50 = vadd.f32 %v649_v0, %v161_v48 }
  0xee   :  { %370 = vmatmul.f32.gmra.mxu3 %v256_v49  ;;  %v241_v51 = vmax.f32 %v162_v50, 0.0 }
  0xf0   :  { %325 = vmatmul.f32.gmra.mxu1 %v241_v51 }
  0xf1   :  { %v209_v52 = vpop.f32.mrf.mxu2 }
  0xf2   :  { %v210_v53 = vadd.f32 %v649_v0, %v209_v52 }
  0xf3   :  { %v164_v54 = vpop.f32.mrf.mxu0 }
  0xf4   :  { %v257_v55 = vmax.f32 %v210_v53, 0.0  ;;  %v165_v56 = vadd.f32 %v649_v0, %v164_v54 }
  0xf6   :  { %373 = vmatmul.f32.gmra.mxu3 %v257_v55  ;;  %v242_v57 = vmax.f32 %v165_v56, 0.0 }
  0xf8   :  { %328 = vmatmul.f32.gmra.mxu1 %v242_v57 }
  0xf9   :  { %v212_v58 = vpop.f32.mrf.mxu2 }
  0xfa   :  { %v213_v59 = vadd.f32 %v649_v0, %v212_v58 }
  0xfb   :  { %v167_v60 = vpop.f32.mrf.mxu0 }
  0xfc   :  { %v258_v61 = vmax.f32 %v213_v59, 0.0  ;;  %v168_v62 = vadd.f32 %v649_v0, %v167_v60 }
  0xfe   :  { %376 = vmatmul.f32.gmra.mxu3 %v258_v61  ;;  %v243_v63 = vmax.f32 %v168_v62, 0.0 }
 0x100   :  { %331 = vmatmul.f32.gmra.mxu1 %v243_v63 }
 0x101   :  { %v215_v1 = vpop.f32.mrf.mxu2 }
 0x102   :  { %v216_v2 = vadd.f32 %v649_v0, %v215_v1 }
 0x103   :  { %v170_v3 = vpop.f32.mrf.mxu0 }
 0x104   :  { %v259_v4 = vmax.f32 %v216_v2, 0.0  ;;  %v171_v5 = vadd.f32 %v649_v0, %v170_v3 }
 0x106   :  { %379 = vmatmul.f32.gmra.mxu3 %v259_v4  ;;  %v244_v6 = vmax.f32 %v171_v5, 0.0 }
 0x108   :  { %334 = vmatmul.f32.gmra.mxu1 %v244_v6 }
 0x109   :  { %v218_v7 = vpop.f32.mrf.mxu2 }
 0x10a   :  { %v219_v8 = vadd.f32 %v649_v0, %v218_v7 }
 0x10b   :  { %v173_v9 = vpop.f32.mrf.mxu0 }
 0x10c   :  { %v260_v10 = vmax.f32 %v219_v8, 0.0  ;;  %v174_v11 = vadd.f32 %v649_v0, %v173_v9 }
 0x10e   :  { %382 = vmatmul.f32.gmra.mxu3 %v260_v10  ;;  %v245_v12 = vmax.f32 %v174_v11, 0.0 }
 0x110   :  { %337 = vmatmul.f32.gmra.mxu1 %v245_v12 }
 0x111   :  { %v221_v13 = vpop.f32.mrf.mxu2 }
 0x112   :  { %v222_v14 = vadd.f32 %v649_v0, %v221_v13 }
 0x113   :  { %v176_v15 = vpop.f32.mrf.mxu0 }
 0x114   :  { %v261_v16 = vmax.f32 %v222_v14, 0.0  ;;  %v177_v17 = vadd.f32 %v649_v0, %v176_v15 }
 0x116   :  { %385 = vmatmul.f32.gmra.mxu3 %v261_v16  ;;  %v246_v18 = vmax.f32 %v177_v17, 0.0 }
 0x118   :  { %340 = vmatmul.f32.gmra.mxu1 %v246_v18 }
 0x119   :  { %v224_v19 = vpop.f32.mrf.mxu2 }
 0x11a   :  { %v225_v20 = vadd.f32 %v649_v0, %v224_v19 }
 0x11b   :  { %v179_v21 = vpop.f32.mrf.mxu0 }
 0x11c   :  { %v262_v22 = vmax.f32 %v225_v20, 0.0  ;;  %v180_v23 = vadd.f32 %v649_v0, %v179_v21 }
 0x11e   :  { %388 = vmatmul.f32.gmra.mxu3 %v262_v22  ;;  %v247_v24 = vmax.f32 %v180_v23, 0.0 }
 0x120   :  { %343 = vmatmul.f32.gmra.mxu1 %v247_v24 }
 0x121   :  { %v227_v25 = vpop.f32.mrf.mxu2 }
 0x122   :  { %v228_v26 = vadd.f32 %v649_v0, %v227_v25 }
 0x123   :  { %v182_v27 = vpop.f32.mrf.mxu0 }
 0x124   :  { %v263_v28 = vmax.f32 %v228_v26, 0.0  ;;  %v183_v29 = vadd.f32 %v649_v0, %v182_v27 }
 0x126   :  { %391 = vmatmul.f32.gmra.mxu3 %v263_v28  ;;  %v248_v30 = vmax.f32 %v183_v29, 0.0 }
 0x128   :  { %346 = vmatmul.f32.gmra.mxu1 %v248_v30 }
 0x129   :  { %v230_v31 = vpop.f32.mrf.mxu2 }
 0x12a   :  { %v231_v32 = vadd.f32 %v649_v0, %v230_v31 }
 0x12c   :  { %v264_v34 = vmax.f32 %v231_v32, 0.0 }
 0x12d   :  { %v302_v35 = vpop.f32.mrf.mxu1 }
 0x12e   :  { %394 = vmatmul.f32.gmra.mxu3 %v264_v34  ;;  %v303_v36 = vadd.f32 %v686_v33, %v302_v35 }
 0x130   :  { %398 = vst [vmem:[#allocation8] sm:$0xff] %v303_v36 }
 0x135   :  { %v305_v37 = vpop.f32.mrf.mxu1 }
 0x136   :  { %v306_v38 = vadd.f32 %v686_v33, %v305_v37 }
 0x138   :  { %399 = vst [vmem:[#allocation8 + $0x8] sm:$0xff] %v306_v38 }
 0x139   :  { %v350_v39 = vpop.f32.mrf.mxu3 }
 0x13a   :  { %v351_v40 = vadd.f32 %v686_v33, %v350_v39 }
 0x13c   :  { %414 = vst [vmem:[#allocation8 + $0x80] sm:$0xff] %v351_v40 }
 0x13d   :  { %v308_v0 = vpop.f32.mrf.mxu1 }
 0x13e   :  { %v309_v41 = vadd.f32 %v686_v33, %v308_v0 }
 0x140   :  { %400 = vst [vmem:[#allocation8 + $0x10] sm:$0xff] %v309_v41 }
 0x141   :  { %v353_v42 = vpop.f32.mrf.mxu3 }
 0x142   :  { %v354_v43 = vadd.f32 %v686_v33, %v353_v42 }
 0x144   :  { %415 = vst [vmem:[#allocation8 + $0x88] sm:$0xff] %v354_v43 }
 0x145   :  { %v311_v44 = vpop.f32.mrf.mxu1 }
 0x146   :  { %v312_v45 = vadd.f32 %v686_v33, %v311_v44 }
 0x148   :  { %401 = vst [vmem:[#allocation8 + $0x18] sm:$0xff] %v312_v45 }
 0x149   :  { %v356_v46 = vpop.f32.mrf.mxu3 }
 0x14a   :  { %v357_v47 = vadd.f32 %v686_v33, %v356_v46 }
 0x14c   :  { %416 = vst [vmem:[#allocation8 + $0x90] sm:$0xff] %v357_v47 }
 0x14d   :  { %v314_v48 = vpop.f32.mrf.mxu1 }
 0x14e   :  { %v315_v49 = vadd.f32 %v686_v33, %v314_v48 }
 0x150   :  { %402 = vst [vmem:[#allocation8 + $0x20] sm:$0xff] %v315_v49 }
 0x151   :  { %v359_v50 = vpop.f32.mrf.mxu3 }
 0x152   :  { %v360_v51 = vadd.f32 %v686_v33, %v359_v50 }
 0x154   :  { %417 = vst [vmem:[#allocation8 + $0x98] sm:$0xff] %v360_v51 }
 0x155   :  { %v317_v52 = vpop.f32.mrf.mxu1 }
 0x156   :  { %v318_v53 = vadd.f32 %v686_v33, %v317_v52 }
 0x158   :  { %403 = vst [vmem:[#allocation8 + $0x28] sm:$0xff] %v318_v53 }
 0x159   :  { %v362_v54 = vpop.f32.mrf.mxu3 }
 0x15a   :  { %v363_v55 = vadd.f32 %v686_v33, %v362_v54 }
 0x15c   :  { %418 = vst [vmem:[#allocation8 + $0xa0] sm:$0xff] %v363_v55 }
 0x15d   :  { %v320_v56 = vpop.f32.mrf.mxu1 }
 0x15e   :  { %v321_v57 = vadd.f32 %v686_v33, %v320_v56 }
 0x160   :  { %404 = vst [vmem:[#allocation8 + $0x30] sm:$0xff] %v321_v57 }
 0x161   :  { %v365_v58 = vpop.f32.mrf.mxu3 }
 0x162   :  { %v366_v59 = vadd.f32 %v686_v33, %v365_v58 }
 0x164   :  { %419 = vst [vmem:[#allocation8 + $0xa8] sm:$0xff] %v366_v59 }
 0x165   :  { %v323_v60 = vpop.f32.mrf.mxu1 }
 0x166   :  { %v324_v61 = vadd.f32 %v686_v33, %v323_v60 }
 0x168   :  { %405 = vst [vmem:[#allocation8 + $0x38] sm:$0xff] %v324_v61 }
 0x169   :  { %v368_v62 = vpop.f32.mrf.mxu3 }
 0x16a   :  { %v369_v63 = vadd.f32 %v686_v33, %v368_v62 }
 0x16c   :  { %420 = vst [vmem:[#allocation8 + $0xb0] sm:$0xff] %v369_v63 }
 0x16d   :  { %v326_v1 = vpop.f32.mrf.mxu1 }
 0x16e   :  { %v327_v2 = vadd.f32 %v686_v33, %v326_v1 }
 0x170   :  { %406 = vst [vmem:[#allocation8 + $0x40] sm:$0xff] %v327_v2 }
 0x171   :  { %v371_v3 = vpop.f32.mrf.mxu3 }
 0x172   :  { %v372_v4 = vadd.f32 %v686_v33, %v371_v3 }
 0x174   :  { %421 = vst [vmem:[#allocation8 + $0xb8] sm:$0xff] %v372_v4 }
 0x175   :  { %v329_v5 = vpop.f32.mrf.mxu1 }
 0x176   :  { %v330_v6 = vadd.f32 %v686_v33, %v329_v5 }
 0x178   :  { %407 = vst [vmem:[#allocation8 + $0x48] sm:$0xff] %v330_v6 }
 0x179   :  { %v374_v7 = vpop.f32.mrf.mxu3 }
 0x17a   :  { %v375_v8 = vadd.f32 %v686_v33, %v374_v7 }
 0x17c   :  { %422 = vst [vmem:[#allocation8 + $0xc0] sm:$0xff] %v375_v8 }
 0x17d   :  { %v332_v9 = vpop.f32.mrf.mxu1 }
 0x17e   :  { %v333_v10 = vadd.f32 %v686_v33, %v332_v9 }
 0x180   :  { %408 = vst [vmem:[#allocation8 + $0x50] sm:$0xff] %v333_v10 }
 0x181   :  { %v377_v11 = vpop.f32.mrf.mxu3 }
 0x182   :  { %v378_v12 = vadd.f32 %v686_v33, %v377_v11 }
 0x184   :  { %423 = vst [vmem:[#allocation8 + $0xc8] sm:$0xff] %v378_v12 }
 0x185   :  { %v335_v13 = vpop.f32.mrf.mxu1 }
 0x186   :  { %v336_v14 = vadd.f32 %v686_v33, %v335_v13 }
 0x188   :  { %409 = vst [vmem:[#allocation8 + $0x58] sm:$0xff] %v336_v14 }
 0x189   :  { %v380_v15 = vpop.f32.mrf.mxu3 }
 0x18a   :  { %v381_v16 = vadd.f32 %v686_v33, %v380_v15 }
 0x18c   :  { %424 = vst [vmem:[#allocation8 + $0xd0] sm:$0xff] %v381_v16 }
 0x18d   :  { %v338_v17 = vpop.f32.mrf.mxu1 }
 0x18e   :  { %v339_v18 = vadd.f32 %v686_v33, %v338_v17 }
 0x190   :  { %410 = vst [vmem:[#allocation8 + $0x60] sm:$0xff] %v339_v18 }
 0x191   :  { %v383_v19 = vpop.f32.mrf.mxu3 }
 0x192   :  { %v384_v20 = vadd.f32 %v686_v33, %v383_v19 }
 0x194   :  { %425 = vst [vmem:[#allocation8 + $0xd8] sm:$0xff] %v384_v20 }
 0x195   :  { %v341_v21 = vpop.f32.mrf.mxu1 }
 0x196   :  { %v342_v22 = vadd.f32 %v686_v33, %v341_v21 }
 0x198   :  { %411 = vst [vmem:[#allocation8 + $0x68] sm:$0xff] %v342_v22 }
 0x199   :  { %v386_v23 = vpop.f32.mrf.mxu3 }
 0x19a   :  { %v387_v24 = vadd.f32 %v686_v33, %v386_v23 }
 0x19c   :  { %426 = vst [vmem:[#allocation8 + $0xe0] sm:$0xff] %v387_v24 }
 0x19d   :  { %v344_v25 = vpop.f32.mrf.mxu1 }
 0x19e   :  { %v345_v26 = vadd.f32 %v686_v33, %v344_v25 }
 0x1a0   :  { %412 = vst [vmem:[#allocation8 + $0x70] sm:$0xff] %v345_v26 }
 0x1a1   :  { %v389_v27 = vpop.f32.mrf.mxu3 }
 0x1a2   :  { %v390_v28 = vadd.f32 %v686_v33, %v389_v27 }
 0x1a4   :  { %427 = vst [vmem:[#allocation8 + $0xe8] sm:$0xff] %v390_v28 }
 0x1a5   :  { %v347_v29 = vpop.f32.mrf.mxu1 }
 0x1a6   :  { %v348_v30 = vadd.f32 %v686_v33, %v347_v29 }
 0x1a8   :  { %413 = vst [vmem:[#allocation8 + $0x78] sm:$0xff] %v348_v30 }
 0x1a9   :  { %v392_v31 = vpop.f32.mrf.mxu3 }
 0x1aa   :  { %v393_v32 = vadd.f32 %v686_v33, %v392_v31 }
 0x1ac   :  { %428 = vst [vmem:[#allocation8 + $0xf0] sm:$0xff] %v393_v32 }
 0x1b1   :  { %v395_v34 = vpop.f32.mrf.mxu3 }
 0x1b2   :  { %v396_v35 = vadd.f32 %v686_v33, %v395_v34 }
 0x1b4   :  { %429 = vst [vmem:[#allocation8 + $0xf8] sm:$0xff] %v396_v35 }
 0x1b5   :  { %442 = dma.vmem_to_hbm [thread:$0]  %s435_s10, 4096, %s437_s13, [#allocation4], %s593_s26, %s593_s26, %s594_s27  }
 0x1b6   :  { %590 = dma.done.wait [#allocation4], 4096  }
 0x1b7   :  { %591 = vsyncadd [#allocation4], 4294963200 }
 0x1b8   :  { %447 = vsyncpa [#allocation3], 1 }
 0x1b9   :  { %448 = vsyncpa [#allocation6], 1 }
 0x1ba   :  { %449 = vsyncpa [#allocation4], 1 }

</bundles_post_ra>
